<compile_context>
chip_gen: v7x
topology: tpu7x:2x2x1
jax: 0.10.0
libtpu: 0.0.40
codegen_flags: <defaults>
</compile_context>

<pallas_src>
import jax
import jax.numpy as jnp
from jax.experimental import pallas as pl
from jax.experimental.pallas import tpu as pltpu


def _conv1x1_stride2_kernel(w_ref, b_ref, s_ref, x_ref, o_ref):
    """One (batch, row-block) tile of the stride-2 1x1 conv.

    w_ref: SMEM (Cout, Cin) f32 scalars
    b_ref: SMEM (Cout,)     f32 scalars
    s_ref: VMEM (2*Wp, Ws)  f32 0/1 stride-2 selection matrix (resident, fetched once)
    x_ref: VMEM (1, Cin, th, 2*Wp) row-pair view of the input (even|odd row per pair)
    o_ref: VMEM (1, Cout, th, Ws)
    """
    cin = x_ref.shape[1]
    cout = o_ref.shape[1]

    sel = s_ref[...]
    # Stride-2 spatial gather: one MXU matmul per input channel picks the even row
    # of each row pair and every other column. The selection matrix is 0/1, so the
    # result is an exact copy of the sampled pixels (precision HIGHEST).
    xc = [
        jnp.dot(x_ref[0, c].astype(jnp.float32), sel,
                preferred_element_type=jnp.float32,
                precision=jax.lax.Precision.HIGHEST)
        for c in range(cin)
    ]
    # Channel mixing: Cout*Cin scalar-broadcast FMAs on compacted tiles. Bias is
    # folded into the final add (no jnp.full materialization) and each output
    # channel is stored as soon as it is ready (no concatenate epilogue).
    for o in range(cout):
        acc = w_ref[o, 0] * xc[0]
        for c in range(1, cin):
            acc = acc + w_ref[o, c] * xc[c]
        o_ref[0, o] = (acc + b_ref[o]).astype(o_ref.dtype)


def _pick_row_tile(hs, batch, bytes_per_row, vmem_tile_budget):
    """Output rows per grid step: a divisor of hs, a multiple of 8 sublanes (or all
    of hs), within the per-tile VMEM budget, and leaving >=2 total grid steps when
    batch == 1 so both v7x TensorCores have work."""
    cap = max(1, vmem_tile_budget // max(1, bytes_per_row))
    cands = [d for d in range(1, hs + 1)
             if hs % d == 0 and (d % 8 == 0 or d == hs) and d <= cap]
    if not cands:
        return hs
    if batch == 1:
        smaller = [d for d in cands if d < hs]
        if smaller:
            cands = smaller
    return max(cands)


def conv1x1_stride2(x_nchw, weight, bias):
    """1x1 conv with stride 2, NCHW in / NCHW out. weight: (Cout, Cin, 1, 1)."""
    n, cin, h, w = x_nchw.shape
    cout = weight.shape[0]
    hs = (h + 1) // 2
    ws = (w + 1) // 2
    hp, wp = 2 * hs, 2 * ws

    # Odd H/W: pad one trailing row/column (padded odd-index rows/cols are never
    # sampled by the stride-2 gather, so the pad values are irrelevant).
    if hp != h or wp != w:
        x_nchw = jnp.pad(x_nchw, ((0, 0), (0, 0), (0, hp - h), (0, wp - w)))

    # Free (metadata-only) row-pair view: last dim holds [row 2h' | row 2h'+1].
    xv = x_nchw.reshape(n, cin, hs, 2 * wp)

    # 0/1 selection matrix: output column w' <- lane 2*w' (even row, even column).
    sel = (jnp.arange(2 * wp)[:, None] == 2 * jnp.arange(ws)[None, :]
           ).astype(jnp.float32)

    wm = weight.reshape(cout, cin).astype(jnp.float32)   # SMEM scalars
    bm = bias.astype(jnp.float32)                        # SMEM scalars

    # Per-generation VMEM sizing (v7x: 64 MiB/TC; v5e/v6e: 128 MiB).
    try:
        vmem_cap = int(pltpu.get_tpu_info().vmem_capacity_bytes)
    except Exception:
        vmem_cap = 64 * 1024 * 1024
    vmem_cap = max(vmem_cap, 32 * 1024 * 1024)

    bytes_per_row = cin * 2 * wp * 4                      # one row-pair, all channels
    th = _pick_row_tile(hs, n, bytes_per_row, vmem_tile_budget=vmem_cap // 16)
    grid = (n, hs // th)

    out = pl.pallas_call(
        _conv1x1_stride2_kernel,
        out_shape=jax.ShapeDtypeStruct((n, cout, hs, ws), x_nchw.dtype),
        grid=grid,
        in_specs=[
            pl.BlockSpec(memory_space=pltpu.MemorySpace.SMEM),              # weights
            pl.BlockSpec(memory_space=pltpu.MemorySpace.SMEM),              # bias
            pl.BlockSpec((2 * wp, ws), lambda i, j: (0, 0)),                # selection
            pl.BlockSpec((1, cin, th, 2 * wp), lambda i, j: (i, 0, j, 0)),  # x row-pairs
        ],
        out_specs=pl.BlockSpec((1, cout, th, ws), lambda i, j: (i, 0, j, 0)),
        compiler_params=pltpu.CompilerParams(
            dimension_semantics=("parallel", "parallel"),
            vmem_limit_bytes=min(vmem_cap // 2, 96 * 1024 * 1024),
        ),
    )(wm, bm, sel, xv)
    return out


def model_forward(x, weight, bias):
    v1 = conv1x1_stride2(x, weight, bias)
    # TODO(synk): the reference's `v2 = v1 - x` is shape-invalid (4 vs 3 channels,
    # H/2 vs H spatial); PyTorch raises there, so we return the conv output v1.
    return v1


def _reference(x, weight, bias):
    xs = x[:, :, ::2, ::2]
    cout, cin = weight.shape[0], weight.shape[1]
    return (jnp.einsum("oc,nchw->nohw", weight.reshape(cout, cin), xs)
            + bias[None, :, None, None])


if __name__ == "__main__":
    key = jax.random.PRNGKey(0)
    kx, kw, kb, kx2 = jax.random.split(key, 4)

    COUT, CIN = 4, 3
    weight = jax.random.normal(kw, (COUT, CIN, 1, 1), dtype=jnp.float32) * 0.1
    bias = jax.random.normal(kb, (COUT,), dtype=jnp.float32) * 0.1

    # Case 1: the module's own input shape (even H/W -> fully fused stride path).
    x1 = jax.random.normal(kx, (1, CIN, 64, 64), dtype=jnp.float32)
    out1 = jax.block_until_ready(model_forward(x1, weight, bias))
    ref1 = _reference(x1, weight, bias)
    assert out1.shape == ref1.shape, (out1.shape, ref1.shape)
    assert jnp.allclose(out1, ref1, atol=1e-4, rtol=1e-4), "mismatch (even case)"

    # Case 2: odd spatial dims + batch > 1 (exercises the pad path and batch axis).
    x2 = jax.random.normal(kx2, (2, CIN, 17, 23), dtype=jnp.float32)
    out2 = jax.block_until_ready(model_forward(x2, weight, bias))
    ref2 = _reference(x2, weight, bias)
    assert out2.shape == ref2.shape, (out2.shape, ref2.shape)
    assert jnp.allclose(out2, ref2, atol=1e-4, rtol=1e-4), "mismatch (odd case)"

    print("KERNEL_OK")
</pallas_src>

<mosaic_0001>
module attributes {stable_mosaic.version = 11 : i64} {
  func.func @_conv1x1_stride2_kernel(%arg0: i32, %arg1: i32, %arg2: memref<4x3xf32, #tpu.memory_space<smem>>, %arg3: memref<4xf32, #tpu.memory_space<smem>>, %arg4: memref<128x32xf32, #tpu.memory_space<vmem>>, %arg5: memref<1x3x16x128xf32, #tpu.memory_space<vmem>>, %arg6: memref<1x4x16x32xf32, #tpu.memory_space<vmem>>) attributes {dimension_semantics = [#tpu.dimension_semantics<parallel>, #tpu.dimension_semantics<parallel>], iteration_bounds = array<i64: 1, 2>, scalar_prefetch = 0 : i64, scratch_operands = 0 : i64, tpu.core_type = #tpu.core_type<tc>, window_params = [{transform_indices = @transform_0, window_bounds = array<i64: 4, 3>}, {transform_indices = @transform_1, window_bounds = array<i64: 4>}, {pipeline_mode = #tpu.pipeline_mode<synchronous>, transform_indices = @transform_2, window_bounds = array<i64: 128, 32>}, {transform_indices = @transform_3, window_bounds = array<i64: 1, 3, 16, 128>}, {transform_indices = @transform_4, window_bounds = array<i64: 1, 4, 16, 32>}]} {
    %c0 = arith.constant 0 : index
    %c0_0 = arith.constant 0 : index
    %0 = vector.load %arg4[%c0, %c0_0] : memref<128x32xf32, #tpu.memory_space<vmem>>, vector<128x32xf32>
    %c0_1 = arith.constant 0 : index
    %c0_2 = arith.constant 0 : index
    %c0_3 = arith.constant 0 : index
    %c0_4 = arith.constant 0 : index
    %1 = vector.load %arg5[%c0_1, %c0_2, %c0_3, %c0_4] : memref<1x3x16x128xf32, #tpu.memory_space<vmem>>, vector<1x1x16x128xf32>
    %2 = vector.shape_cast %1 : vector<1x1x16x128xf32> to vector<16x128xf32>
    %cst = arith.constant dense<0.000000e+00> : vector<16x32xf32>
    %3 = tpu.matmul %2, %0, %cst {dimension_numbers = #tpu.dot_dimension_numbers<[1], [0], [0], [1], [0, 0, 1, 1], [], []>, precision = #tpu.contract_precision<fp32>} : vector<16x128xf32>, vector<128x32xf32>, vector<16x32xf32> -> vector<16x32xf32>
    %c0_5 = arith.constant 0 : index
    %c1 = arith.constant 1 : index
    %c0_6 = arith.constant 0 : index
    %c0_7 = arith.constant 0 : index
    %4 = vector.load %arg5[%c0_5, %c1, %c0_6, %c0_7] : memref<1x3x16x128xf32, #tpu.memory_space<vmem>>, vector<1x1x16x128xf32>
    %5 = vector.shape_cast %4 : vector<1x1x16x128xf32> to vector<16x128xf32>
    %cst_8 = arith.constant dense<0.000000e+00> : vector<16x32xf32>
    %6 = tpu.matmul %5, %0, %cst_8 {dimension_numbers = #tpu.dot_dimension_numbers<[1], [0], [0], [1], [0, 0, 1, 1], [], []>, precision = #tpu.contract_precision<fp32>} : vector<16x128xf32>, vector<128x32xf32>, vector<16x32xf32> -> vector<16x32xf32>
    %c0_9 = arith.constant 0 : index
    %c2 = arith.constant 2 : index
    %c0_10 = arith.constant 0 : index
    %c0_11 = arith.constant 0 : index
    %7 = vector.load %arg5[%c0_9, %c2, %c0_10, %c0_11] : memref<1x3x16x128xf32, #tpu.memory_space<vmem>>, vector<1x1x16x128xf32>
    %8 = vector.shape_cast %7 : vector<1x1x16x128xf32> to vector<16x128xf32>
    %cst_12 = arith.constant dense<0.000000e+00> : vector<16x32xf32>
    %9 = tpu.matmul %8, %0, %cst_12 {dimension_numbers = #tpu.dot_dimension_numbers<[1], [0], [0], [1], [0, 0, 1, 1], [], []>, precision = #tpu.contract_precision<fp32>} : vector<16x128xf32>, vector<128x32xf32>, vector<16x32xf32> -> vector<16x32xf32>
    %c0_13 = arith.constant 0 : index
    %c0_14 = arith.constant 0 : index
    %10 = memref.load %arg2[%c0_13, %c0_14] : memref<4x3xf32, #tpu.memory_space<smem>>
    %11 = vector.broadcast %10 : f32 to vector<16x32xf32>
    %12 = arith.mulf %11, %3 : vector<16x32xf32>
    %c0_15 = arith.constant 0 : index
    %c1_16 = arith.constant 1 : index
    %13 = memref.load %arg2[%c0_15, %c1_16] : memref<4x3xf32, #tpu.memory_space<smem>>
    %14 = vector.broadcast %13 : f32 to vector<16x32xf32>
    %15 = arith.mulf %14, %6 : vector<16x32xf32>
    %16 = arith.addf %12, %15 : vector<16x32xf32>
    %c0_17 = arith.constant 0 : index
    %c2_18 = arith.constant 2 : index
    %17 = memref.load %arg2[%c0_17, %c2_18] : memref<4x3xf32, #tpu.memory_space<smem>>
    %18 = vector.broadcast %17 : f32 to vector<16x32xf32>
    %19 = arith.mulf %18, %9 : vector<16x32xf32>
    %20 = arith.addf %16, %19 : vector<16x32xf32>
    %c0_19 = arith.constant 0 : index
    %21 = memref.load %arg3[%c0_19] : memref<4xf32, #tpu.memory_space<smem>>
    %22 = vector.broadcast %21 : f32 to vector<16x32xf32>
    %23 = arith.addf %20, %22 : vector<16x32xf32>
    %c0_20 = arith.constant 0 : index
    %c0_21 = arith.constant 0 : index
    %c0_22 = arith.constant 0 : index
    %c0_23 = arith.constant 0 : index
    %24 = vector.load %arg6[%c0_20, %c0_21, %c0_22, %c0_23] : memref<1x4x16x32xf32, #tpu.memory_space<vmem>>, vector<1x1x16x32xf32>
    %25 = vector.shape_cast %24 : vector<1x1x16x32xf32> to vector<16x32xf32>
    %26 = vector.shape_cast %23 : vector<16x32xf32> to vector<1x1x16x32xf32>
    tpu.vector_store %arg6[%c0_20, %c0_21, %c0_22, %c0_23], %26 {strides = array<i32>} : memref<1x4x16x32xf32, #tpu.memory_space<vmem>>, vector<1x1x16x32xf32>,
    %c1_24 = arith.constant 1 : index
    %c0_25 = arith.constant 0 : index
    %27 = memref.load %arg2[%c1_24, %c0_25] : memref<4x3xf32, #tpu.memory_space<smem>>
    %28 = vector.broadcast %27 : f32 to vector<16x32xf32>
    %29 = arith.mulf %28, %3 : vector<16x32xf32>
    %c1_26 = arith.constant 1 : index
    %c1_27 = arith.constant 1 : index
    %30 = memref.load %arg2[%c1_26, %c1_27] : memref<4x3xf32, #tpu.memory_space<smem>>
    %31 = vector.broadcast %30 : f32 to vector<16x32xf32>
    %32 = arith.mulf %31, %6 : vector<16x32xf32>
    %33 = arith.addf %29, %32 : vector<16x32xf32>
    %c1_28 = arith.constant 1 : index
    %c2_29 = arith.constant 2 : index
    %34 = memref.load %arg2[%c1_28, %c2_29] : memref<4x3xf32, #tpu.memory_space<smem>>
    %35 = vector.broadcast %34 : f32 to vector<16x32xf32>
    %36 = arith.mulf %35, %9 : vector<16x32xf32>
    %37 = arith.addf %33, %36 : vector<16x32xf32>
    %c1_30 = arith.constant 1 : index
    %38 = memref.load %arg3[%c1_30] : memref<4xf32, #tpu.memory_space<smem>>
    %39 = vector.broadcast %38 : f32 to vector<16x32xf32>
    %40 = arith.addf %37, %39 : vector<16x32xf32>
    %c0_31 = arith.constant 0 : index
    %c1_32 = arith.constant 1 : index
    %c0_33 = arith.constant 0 : index
    %c0_34 = arith.constant 0 : index
    %41 = vector.load %arg6[%c0_31, %c1_32, %c0_33, %c0_34] : memref<1x4x16x32xf32, #tpu.memory_space<vmem>>, vector<1x1x16x32xf32>
    %42 = vector.shape_cast %41 : vector<1x1x16x32xf32> to vector<16x32xf32>
    %43 = vector.shape_cast %40 : vector<16x32xf32> to vector<1x1x16x32xf32>
    tpu.vector_store %arg6[%c0_31, %c1_32, %c0_33, %c0_34], %43 {strides = array<i32>} : memref<1x4x16x32xf32, #tpu.memory_space<vmem>>, vector<1x1x16x32xf32>,
    %c2_35 = arith.constant 2 : index
    %c0_36 = arith.constant 0 : index
    %44 = memref.load %arg2[%c2_35, %c0_36] : memref<4x3xf32, #tpu.memory_space<smem>>
    %45 = vector.broadcast %44 : f32 to vector<16x32xf32>
    %46 = arith.mulf %45, %3 : vector<16x32xf32>
    %c2_37 = arith.constant 2 : index
    %c1_38 = arith.constant 1 : index
    %47 = memref.load %arg2[%c2_37, %c1_38] : memref<4x3xf32, #tpu.memory_space<smem>>
    %48 = vector.broadcast %47 : f32 to vector<16x32xf32>
    %49 = arith.mulf %48, %6 : vector<16x32xf32>
    %50 = arith.addf %46, %49 : vector<16x32xf32>
    %c2_39 = arith.constant 2 : index
    %c2_40 = arith.constant 2 : index
    %51 = memref.load %arg2[%c2_39, %c2_40] : memref<4x3xf32, #tpu.memory_space<smem>>
    %52 = vector.broadcast %51 : f32 to vector<16x32xf32>
    %53 = arith.mulf %52, %9 : vector<16x32xf32>
    %54 = arith.addf %50, %53 : vector<16x32xf32>
    %c2_41 = arith.constant 2 : index
    %55 = memref.load %arg3[%c2_41] : memref<4xf32, #tpu.memory_space<smem>>
    %56 = vector.broadcast %55 : f32 to vector<16x32xf32>
    %57 = arith.addf %54, %56 : vector<16x32xf32>
    %c0_42 = arith.constant 0 : index
    %c2_43 = arith.constant 2 : index
    %c0_44 = arith.constant 0 : index
    %c0_45 = arith.constant 0 : index
    %58 = vector.load %arg6[%c0_42, %c2_43, %c0_44, %c0_45] : memref<1x4x16x32xf32, #tpu.memory_space<vmem>>, vector<1x1x16x32xf32>
    %59 = vector.shape_cast %58 : vector<1x1x16x32xf32> to vector<16x32xf32>
    %60 = vector.shape_cast %57 : vector<16x32xf32> to vector<1x1x16x32xf32>
    tpu.vector_store %arg6[%c0_42, %c2_43, %c0_44, %c0_45], %60 {strides = array<i32>} : memref<1x4x16x32xf32, #tpu.memory_space<vmem>>, vector<1x1x16x32xf32>,
    %c3 = arith.constant 3 : index
    %c0_46 = arith.constant 0 : index
    %61 = memref.load %arg2[%c3, %c0_46] : memref<4x3xf32, #tpu.memory_space<smem>>
    %62 = vector.broadcast %61 : f32 to vector<16x32xf32>
    %63 = arith.mulf %62, %3 : vector<16x32xf32>
    %c3_47 = arith.constant 3 : index
    %c1_48 = arith.constant 1 : index
    %64 = memref.load %arg2[%c3_47, %c1_48] : memref<4x3xf32, #tpu.memory_space<smem>>
    %65 = vector.broadcast %64 : f32 to vector<16x32xf32>
    %66 = arith.mulf %65, %6 : vector<16x32xf32>
    %67 = arith.addf %63, %66 : vector<16x32xf32>
    %c3_49 = arith.constant 3 : index
    %c2_50 = arith.constant 2 : index
    %68 = memref.load %arg2[%c3_49, %c2_50] : memref<4x3xf32, #tpu.memory_space<smem>>
    %69 = vector.broadcast %68 : f32 to vector<16x32xf32>
    %70 = arith.mulf %69, %9 : vector<16x32xf32>
    %71 = arith.addf %67, %70 : vector<16x32xf32>
    %c3_51 = arith.constant 3 : index
    %72 = memref.load %arg3[%c3_51] : memref<4xf32, #tpu.memory_space<smem>>
    %73 = vector.broadcast %72 : f32 to vector<16x32xf32>
    %74 = arith.addf %71, %73 : vector<16x32xf32>
    %c0_52 = arith.constant 0 : index
    %c3_53 = arith.constant 3 : index
    %c0_54 = arith.constant 0 : index
    %c0_55 = arith.constant 0 : index
    %75 = vector.load %arg6[%c0_52, %c3_53, %c0_54, %c0_55] : memref<1x4x16x32xf32, #tpu.memory_space<vmem>>, vector<1x1x16x32xf32>
    %76 = vector.shape_cast %75 : vector<1x1x16x32xf32> to vector<16x32xf32>
    %77 = vector.shape_cast %74 : vector<16x32xf32> to vector<1x1x16x32xf32>
    tpu.vector_store %arg6[%c0_52, %c3_53, %c0_54, %c0_55], %77 {strides = array<i32>} : memref<1x4x16x32xf32, #tpu.memory_space<vmem>>, vector<1x1x16x32xf32>,
    return
  }
  func.func @transform_0(%arg0: i32, %arg1: i32) -> (i32, i32) {
    %c0_i32 = arith.constant 0 : i32
    %c0_i32_0 = arith.constant 0 : i32
    %c0_i32_1 = arith.constant 0 : i32
    return %c0_i32, %c0_i32_0 : i32, i32
  }
  func.func @transform_1(%arg0: i32, %arg1: i32) -> i32 {
    %c0_i32 = arith.constant 0 : i32
    %c0_i32_0 = arith.constant 0 : i32
    return %c0_i32 : i32
  }
  func.func @transform_2(%arg0: i32, %arg1: i32) -> (i32, i32) {
    %c0_i32 = arith.constant 0 : i32
    %c0_i32_0 = arith.constant 0 : i32
    %c0_i32_1 = arith.constant 0 : i32
    return %c0_i32, %c0_i32_0 : i32, i32
  }
  func.func @transform_3(%arg0: i32, %arg1: i32) -> (i32, i32, i32, i32) {
    %c0_i32 = arith.constant 0 : i32
    %c0_i32_0 = arith.constant 0 : i32
    %c0_i32_1 = arith.constant 0 : i32
    return %arg0, %c0_i32, %arg1, %c0_i32_0 : i32, i32, i32, i32
  }
  func.func @transform_4(%arg0: i32, %arg1: i32) -> (i32, i32, i32, i32) {
    %c0_i32 = arith.constant 0 : i32
    %c0_i32_0 = arith.constant 0 : i32
    %c0_i32_1 = arith.constant 0 : i32
    return %arg0, %c0_i32, %arg1, %c0_i32_0 : i32, i32, i32, i32
  }
}

</mosaic_0001>

<bundles_post_ra>
// kernel: tpu_custom_call.1
= control target key start
LH: loop header
LB: loop body
LE: loop exit
PB: predicated region body
PF: predicated region fallthrough
CT: control target
= control target key end

     0   :  { %s5302_s0 = inlined_call_operand.vmem [shape: f32[4,3], index: 0, kind: input, shape index: {}]   ;;  %s5303_s1 = inlined_call_operand.vmem [shape: f32[4], index: 1, kind: input, shape index: {}]   ;;  %s5304_s2 = inlined_call_operand.vmem [shape: f32[128,32], index: 2, kind: input, shape index: {}]   ;;  %s5305_s3 = inlined_call_operand.vmem [shape: f32[1,3,32,128], index: 3, kind: input, shape index: {}]   ;;  %s5306_s4 = inlined_call_operand.hbm [shape: f32[1,4,32,32], index: 4, kind: output, shape index: {}]  }
   0x1   :  { %5311 = sst [smem:[#allocation14_spill]] %s5302_s0 }
   0x2   :  { %9 = vsyncpa [#allocation4], 0 }
   0x3   :  { %10 = vsyncpa [#allocation6], 0 }
   0x4   :  { %11 = vsyncpa [#allocation3], 0 }
   0x5   :  { %13 = vsyncpa [#allocation3 + $0x1], 0  ;;  %s4433_s15 = smov 0   ;;  %s4435_s16 = smov 0  }
   0x6   :  { %s4437_s17 = smov 0   ;;  %s4439_s18 = smov 0  }
   0x7   :  { %s4441_s19 = smov 0   ;;  %s4443_s20 = smov 0  }
   0x8 LB: > { %s2615_s21 = sadd.s32 4294967295, %s4397_s20   ;;  %s2616_s22 = sadd.s32 4294967294, %s4397_s20   ;;  %s4397_s20 = sphi %s4443_s20, %s19_s20   ;;  %s4393_s19 = sphi %s4441_s19, %s5328_s19   ;;  %s4389_s18 = sphi %s4439_s18, %s5327_s18   ;;  %s4385_s17 = sphi %s4437_s17, %s5326_s17   ;;  %s4381_s16 = sphi %s4435_s16, %s5325_s16   ;;  %s4377_s15 = sphi %s4433_s15, %s5324_s15  }
   0x9   : > { %s28_s23 = sadd.s32 1, %s4393_s19  ;;  %s103_s24 = sadd.s32 1, %s4385_s17 }
   0xa   : > { %p29_p0 = scmp.ge.s32.totalorder %s28_s23, 2  ;;  %p110_p1 = scmp.ne.s32.totalorder %s4385_s17, %s4381_s16 }
   0xb   : > { %p111_p2 = scmp.eq.s32.totalorder %s4397_s20, 0  ;;  %p142_p3 = scmp.eq.s32.totalorder %s2615_s21, 1 }
   0xc   : > { %s5330_s23 = smov (%p29_p0, %s28_s23), 0  ;;  %p147_p6 = scmp.ne.s32.totalorder %s4381_s16, %s4377_s15 }
   0xd   : > { %p4472_p4 = por %p111_p2, %p110_p1  ;;  %p4476_p5 = por %p142_p3, %p110_p1 }
   0xe   : > { %s99_s27 = ssub.s32 %s4393_s19, %s5330_s23  ;;  %p148_p8 = scmp.eq.s32.totalorder %s2616_s22, 1 }
   0xf   : > { %s5312_s25 = scalar_select %p4472_p4, 1, 0 }
  0x10   : > { %s5313_s26 = scalar_select %p4476_p5, 1, 0 }
  0x11   : > { %p101_p7 = scmp.eq.s32.totalorder %s99_s27, 0  ;;  %p2617_p9 = scmp.ge.s32.totalorder %s4397_s20, 1 }
  0x12   : > { %p155_p10 = scmp.lt.s32.totalorder %s4397_s20, 3  ;;  %p4489_p11 = por %p148_p8, %p147_p6 }
  0x13   : > { %s4487_s28 = scalar_select %p101_p7, %s4385_s17, %s103_s24  }
  0x14   : > { %s5314_s29 = scalar_select %p4489_p11, 1, 0 }
  0x15   : > { %p4493_p12 = pnand %p2617_p9, %p155_p10  ;;  %p4497_p13 = scmp.eq.s32.totalorder %s2615_s21, 0 }
  0x16   : > { %s5317_s0 = sld [smem:[#allocation14_spill]]  ;;  %s179_s12 = sshll.u32 %s5303_s1, 4  ;;  %s180_s12 = int_to_ptr.vmem [resolvable:$true] %s179_s12 }
  0x17   : > { %s5315_s30 = scalar_select %p4493_p12, 1, 0 }
  0x18   : > { %s5316_s5 = scalar_select %p4497_p13, 1, 0 }
  0x19   : > { %p4236_p0 = pneg %p4493_p12 }
  0x1b   : > { %p4508_p1 = pnand %p4497_p13, %p4236_p0 }
  0x1c   : > { %s168_s8 = sshll.u32 %s5317_s0, 4  ;;  %s169_s8 = int_to_ptr.vmem [resolvable:$true] %s168_s8 }
  0x1d   : > { %s4309_s13 = scalar_lea.vmem %s169_s8, 64  ;;  %p4311_p3 = pneg %p4508_p1 }
  0x1e   : > { %p4310_p2 = scmp.ne.s32.totalorder %s169_s8, %s4309_s13  ;;  %p4317_p8 = scmp.lt.s32.totalorder %s169_s8, %s169_s8 }
  0x1f   : > { %p4318_p9 = scmp.lt.s32.totalorder %s4309_s13, %s4309_s13 }
  0x20   : > { %p4312_p6 = pnand %p4311_p3, %p4310_p2 }
  0x21   : > { %p4319_p10 = por %p4318_p9, %p4317_p8 }
  0x22   : > { %p4313_p7 = pneg %p4312_p6 }
  0x24   : > { %p4320_p11 = pnand %p4319_p10, %p4313_p7 }
  0x26   : > { %4323 = shalt.err (!%p4320_p11)
}
  0x27   : > { %s4399_s14 = smov [#allocation2]   ;;  %s4324_s21 = scalar_lea.vmem %s180_s12, 16 }
  0x28   : > { %4239 = dma.vmem_to_smem (!%p4508_p1), %s169_s8, 64, %s4399_s14, [#allocation4]  }
  0x29   : > { %p4325_p0 = scmp.ne.s32.totalorder %s180_s12, %s4324_s21  ;;  %p4332_p12 = scmp.lt.s32.totalorder %s180_s12, %s180_s12 }
  0x2a   : > { %p4333_p4 = scmp.lt.s32.totalorder %s4324_s21, %s4324_s21 }
  0x2b   : > { %p4327_p5 = pnand %p4325_p0, %p4311_p3 }
  0x2c   : > { %p4334_p2 = por %p4333_p4, %p4332_p12 }
  0x2d   : > { %p4328_p13 = pneg %p4327_p5 }
  0x2f   : > { %p4335_p6 = pnand %p4334_p2, %p4328_p13 }
  0x31   : > { %4338 = shalt.err (!%p4335_p6)
}
  0x32   : > { %s4400_s22 = smov [#allocation5]   ;;  %p2620_p11 = scmp.ge.s32.totalorder %s4397_s20, 2 }
  0x33   : > { %4242 = dma.vmem_to_smem (!%p4508_p1), %s180_s12, 16, %s4400_s22, [#allocation6]  }
  0x34   : > { %189 = sbr.rel (%p2620_p11) target bundleno = 66 (0x42), region = 28  ;;  %p5319_p7 = scmp.ne.s32.totalorder (!%p2620_p11), %s5312_s25, 0 }
  0x3b   : > { %192 = sbr.rel (!%p5319_p7) target bundleno = 66 (0x42), region = 32  ;;  %s194_s24 = sand.u32 (%p5319_p7), 1, %s4385_s17  }
  0x3c   : > { %s2656_s27 = sshll.u32 (%p5319_p7), %s4393_s19, 4  ;;  %s4218_s6 = smul.u32 (%p5319_p7), 48, %s194_s24 }
  0x3d   : > { %s201_s10 = scalar_lea.vmem (%p5319_p7), %s5305_s3, %s2656_s27 }
  0x3e   : > { %v239_v0 = vld [vmem:[%s201_s10] sm:$0xff] (%p5319_p7)  ;;  %v241_v1 = vld [vmem:[%s201_s10 + $0x8] sm:$0xff] (%p5319_p7)  ;;  %s196_s9 = scalar_lea.vmem (%p5319_p7), [#allocation7], %s4218_s6 }
  0x3f   : > { %v243_v2 = vld [vmem:[%s201_s10 + $0x20] sm:$0xff] (%p5319_p7)  ;;  %v245_v3 = vld [vmem:[%s201_s10 + $0x28] sm:$0xff] (%p5319_p7)  ;;  %240 = vst [vmem:[%s196_s9] sm:$0xff] (%p5319_p7), %v239_v0  ;;  %242 = vst [vmem:[%s196_s9 + $0x8] sm:$0xff] (%p5319_p7), %v241_v1 }
  0x40   : > { %v247_v4 = vld [vmem:[%s201_s10 + $0x40] sm:$0xff] (%p5319_p7)  ;;  %v249_v5 = vld [vmem:[%s201_s10 + $0x48] sm:$0xff] (%p5319_p7)  ;;  %244 = vst [vmem:[%s196_s9 + $0x10] sm:$0xff] (%p5319_p7), %v243_v2  ;;  %246 = vst [vmem:[%s196_s9 + $0x18] sm:$0xff] (%p5319_p7), %v245_v3 }
  0x41   : > { %248 = vst [vmem:[%s196_s9 + $0x20] sm:$0xff] (%p5319_p7), %v247_v4  ;;  %250 = vst [vmem:[%s196_s9 + $0x28] sm:$0xff] (%p5319_p7), %v249_v5 }
  0x42 PF: > { %p5320_p4 = scmp.ne.s32.totalorder %s5315_s30, 0 }
  0x43   : > { %p5321_p5 = scmp.ne.s32.totalorder (!%p5320_p4), %s5316_s5, 0 }
  0x44   : > { %259 = sbr.rel (%p5320_p4) target bundleno = 613 (0x265), region = 70 }
  0x4b   : > { %4364 = dma.done.wait (%p5321_p5), [#allocation4], 64  }
  0x4c   : > { %4366 = vsyncadd (%p5321_p5), [#allocation4], 4294967232 }
  0x4d   : > { %4368 = dma.done.wait (%p5321_p5), [#allocation6], 16  }
  0x4e   : > { %4370 = vsyncadd (%p5321_p5), [#allocation6], 4294967280  ;;  %s4542_s25 = sand.u32 1, %s4381_s16  }
  0x4f   : > { %s4219_s11 = smul.u32 48, %s4542_s25 }
  0x51   : > { %s4545_s12 = scalar_lea.vmem [#allocation7], %s4219_s11 }
  0x52   : > { %276 = sfence }
  0x53   : > { %v298_v6 = vld [vmem:[%s5304_s2] sm:$0xff]  ;;  %v299_v7 = vld [vmem:[%s5304_s2 + $0x8] sm:$0xff]  ;;  %v300_v8 = vld [vmem:[%s5304_s2 + $0x10] sm:$0xff]  ;;  %s2633_s22 = sld [smem:[#allocation2 + $0x80]]  ;;  %s5215_s27 = sld [smem:[#allocation2 + $0x1]]  ;;  %vm2394_vm0 = vcmask 261120  }
  0x54   : > { %v317_v9 = vand.u32 4294901760, %v298_v6  ;;  %v320_v10 = vand.u32 4294901760, %v299_v7  ;;  %v4559_v11 = vld [vmem:[%s5304_s2 + $0x18] sm:$0xff]  ;;  %v323_v12 = vand.u32 4294901760, %v300_v8  ;;  %v4564_v13 = vld [vmem:[%s5304_s2 + $0x20] sm:$0xff]  ;;  %v4569_v14 = vld [vmem:[%s5304_s2 + $0x28] sm:$0xff] }
  0x55   : > { %v326_v15 = vand.u32 4294901760, %v4559_v11  ;;  %v329_v17 = vand.u32 4294901760, %v4564_v13  ;;  %v332_v18 = vand.u32 4294901760, %v4569_v14  ;;  %v4581_v20 = vld [vmem:[%s5304_s2 + $0x30] sm:$0xff]  ;;  %v4586_v21 = vld [vmem:[%s5304_s2 + $0x38] sm:$0xff]  ;;  %v4608_v27 = vld [vmem:[%s5304_s2 + $0x40] sm:$0xff] }
  0x56   : > { %v4572_v16 = vpack.c.bf16 %v320_v10, %v317_v9  ;;  %v314_v22 = vld [vmem:[%s4545_s12] sm:$0xff]  ;;  %v335_v25 = vand.u32 4294901760, %v4581_v20  ;;  %v338_v26 = vand.u32 4294901760, %v4586_v21  ;;  %v4613_v28 = vld [vmem:[%s5304_s2 + $0x48] sm:$0xff]  ;;  %v341_v32 = vand.u32 4294901760, %v4608_v27  ;;  %v4639_v35 = vld [vmem:[%s5304_s2 + $0x58] sm:$0xff] }
  0x57   : > { %v4576_v19 = vpack.c.bf16 %v326_v15, %v323_v12  ;;  %v4593_v23 = vand.u32 4294901760, %v314_v22  ;;  %v4601_v24 = vpack.c.bf16 %v332_v18, %v329_v17  ;;  %v344_v33 = vand.u32 4294901760, %v4613_v28  ;;  %v4634_v34 = vld [vmem:[%s5304_s2 + $0x50] sm:$0xff]  ;;  %v315_v39 = vld [vmem:[%s4545_s12 + $0x8] sm:$0xff]  ;;  %v4658_v42 = vld [vmem:[%s5304_s2 + $0x60] sm:$0xff]  ;;  %s2639_s24 = sld [smem:[#allocation2 + $0x100]] }
  0x58   : > { %3613 = vmatprep.subr.bf16.mxu1 %v4572_v16  ;;  %3709 = vmatprep.subr.bf16.mxu0 %v4572_v16  ;;  %v4627_v31 = vpack.c.bf16 %v338_v26, %v335_v25  ;;  %v347_v37 = vand.u32 4294901760, %v4634_v34  ;;  %v350_v41 = vand.u32 4294901760, %v4639_v35  ;;  %v4663_v43 = vld [vmem:[%s5304_s2 + $0x68] sm:$0xff]  ;;  %v4665_v44 = vsub.f32 %v298_v6, %v317_v9  ;;  %v4678_v49 = vld [vmem:[%s5304_s2 + $0x70] sm:$0xff]  ;;  %v4683_v50 = vld [vmem:[%s5304_s2 + $0x78] sm:$0xff]  ;;  %s2645_s5 = sld [smem:[#allocation2 + $0x180]] }
  0x59   : > { %3615 = vmatpush3.bf16.msra.mxu1 %v4572_v16  ;;  %3711 = vmatpush3.bf16.msra.mxu0 %v4572_v16  ;;  %v4616_v29 = vsub.f32 %v314_v22, %v4593_v23  ;;  %v4652_v40 = vpack.c.bf16 %v344_v33, %v341_v32  ;;  %v4667_v45 = vsub.f32 %v299_v7, %v320_v10  ;;  %v4669_v46 = vand.u32 4294901760, %v315_v39  ;;  %s5217_s6 = sld [smem:[#allocation2 + $0x81]]  ;;  %s5223_s10 = sld [smem:[#allocation2 + $0x2]] }
  0x5a   : > { %3617 = vmatprep.subr.bf16.mxu1 %v4576_v19  ;;  %3713 = vmatprep.subr.bf16.mxu0 %v4576_v19  ;;  %v353_v47 = vand.u32 4294901760, %v4658_v42  ;;  %v356_v48 = vand.u32 4294901760, %v4663_v43  ;;  %v4685_v51 = vsub.f32 %v300_v8, %v323_v12  ;;  %v4693_v52 = vpack.c.bf16 %v350_v41, %v347_v37  ;;  %s5219_s7 = sld [smem:[#allocation2 + $0x101]]  ;;  %s5225_s9 = sld [smem:[#allocation2 + $0x82]] }
  0x5b   : > { %v399_v30 = vand.u32 4294901760, %v4616_v29  ;;  %v420_v53 = vand.u32 4294901760, %v4665_v44  ;;  %v427_v54 = vand.u32 4294901760, %v4667_v45  ;;  %v4698_v55 = vsub.f32 %v4559_v11, %v326_v15  ;;  %s5221_s8 = sld [smem:[#allocation2 + $0x181]]  ;;  %s5227_s11 = sld [smem:[#allocation2 + $0x102]] }
  0x5c   : > { %v359_v56 = vand.u32 4294901760, %v4678_v49  ;;  %v362_v57 = vand.u32 4294901760, %v4683_v50  ;;  %v4703_v58 = vsub.f32 %v315_v39, %v4669_v46  ;;  %v4711_v59 = vpack.c.bf16 %v356_v48, %v353_v47  ;;  %s5229_s30 = sld [smem:[#allocation2 + $0x182]]  ;;  %s5231_s13 = sld [smem:[#allocation5]] }
  0x5d   : > { %3619 = vmatpush3.bf16.msra.mxu1 %v4576_v19  ;;  %3715 = vmatpush3.bf16.msra.mxu0 %v4576_v19  ;;  %v400_v36 = vsub.f32 %v4616_v29, %v399_v30  ;;  %v434_v60 = vand.u32 4294901760, %v4685_v51  ;;  %v4717_v61 = vsub.f32 %v4564_v13, %v329_v17  ;;  %v421_v62 = vsub.f32 %v4665_v44, %v420_v53  ;;  %s5233_s14 = sld [smem:[#allocation5 + $0x1]]  ;;  %s5235_s21 = sld [smem:[#allocation5 + $0x2]] }
  0x5e   : > { %3621 = vmatprep.subr.bf16.mxu1 %v4601_v24  ;;  %3717 = vmatprep.subr.bf16.mxu0 %v4601_v24  ;;  %v428_v63 = vsub.f32 %v4667_v45, %v427_v54  ;;  %v441_v0 = vand.u32 4294901760, %v4698_v55  ;;  %v4727_v1 = vsub.f32 %v4569_v14, %v332_v18  ;;  %v4733_v2 = vpack.c.bf16 %v362_v57, %v359_v56  ;;  %s5237_s0 = sld [smem:[#allocation5 + $0x3]] }
  0x5f   : > { %3119 = vmatprep.mubr.f32.mxu0 %v399_v30  ;;  %v401_v38 = vand.u32 4294901760, %v400_v36  ;;  %v409_v3 = vand.u32 4294901760, %v4703_v58  ;;  %v435_v4 = vsub.f32 %v4685_v51, %v434_v60  ;;  %v448_v5 = vand.u32 4294901760, %v4717_v61 }
  0x60   : > { %v4743_v6 = vsub.f32 %v4581_v20, %v335_v25  ;;  %v4748_v7 = vsub.f32 %v4586_v21, %v338_v26  ;;  %v422_v8 = vand.u32 4294901760, %v421_v62  ;;  %v429_v9 = vand.u32 4294901760, %v428_v63 }
  0x61   : > { %3623 = vmatpush3.bf16.msra.mxu1 %v4601_v24  ;;  %3719 = vmatpush3.bf16.msra.mxu0 %v4601_v24  ;;  %v442_v10 = vsub.f32 %v4698_v55, %v441_v0  ;;  %v455_v11 = vand.u32 4294901760, %v4727_v1  ;;  %v4754_v12 = vpack.c.bf16 %v427_v54, %v420_v53  ;;  %v410_v13 = vsub.f32 %v4703_v58, %v409_v3 }
  0x62   : > { %3625 = vmatprep.subr.bf16.mxu1 %v4627_v31  ;;  %3721 = vmatprep.subr.bf16.mxu0 %v4627_v31  ;;  %v4760_v14 = vsub.f32 %v4608_v27, %v341_v32  ;;  %v436_v15 = vand.u32 4294901760, %v435_v4  ;;  %v449_v17 = vsub.f32 %v4717_v61, %v448_v5  ;;  %v462_v18 = vand.u32 4294901760, %v4743_v6 }
  0x63   : > { %3014 = vmatprep.mubr.f32.mxu1 %v401_v38  ;;  %v469_v20 = vand.u32 4294901760, %v4748_v7  ;;  %v4769_v21 = vpack.c.bf16 %v429_v9, %v422_v8  ;;  %v443_v22 = vand.u32 4294901760, %v442_v10  ;;  %v456_v25 = vsub.f32 %v4727_v1, %v455_v11 }
  0x64   : > { %v4775_v26 = vsub.f32 %v4613_v28, %v344_v33  ;;  %v411_v27 = vand.u32 4294901760, %v410_v13  ;;  %v4777_v30 = vpack.c.bf16 %v441_v0, %v434_v60  ;;  %v476_v32 = vand.u32 4294901760, %v4760_v14 }
  0x65   : > { %3627 = vmatpush3.bf16.msra.mxu1 %v4627_v31  ;;  %3723 = vmatpush3.bf16.msra.mxu0 %v4627_v31  ;;  %v4783_v36 = vsub.f32 %v4634_v34, %v347_v37  ;;  %v463_v38 = vsub.f32 %v4743_v6, %v462_v18  ;;  %v470_v39 = vsub.f32 %v4748_v7, %v469_v20  ;;  %v450_v34 = vand.u32 4294901760, %v449_v17 }
  0x66   : > { %3629 = vmatprep.subr.bf16.mxu1 %v4652_v40  ;;  %3725 = vmatprep.subr.bf16.mxu0 %v4652_v40  ;;  %v4792_v28 = vsub.f32 %v4639_v35, %v350_v41  ;;  %v4796_v33 = vpack.c.bf16 %v443_v22, %v436_v15  ;;  %v457_v37 = vand.u32 4294901760, %v456_v25  ;;  %v483_v53 = vand.u32 4294901760, %v4775_v26 }
  0x67   : > { %v4799_v54 = vpack.c.bf16 %v455_v11, %v448_v5  ;;  %v477_v60 = vsub.f32 %v4760_v14, %v476_v32  ;;  %v4805_v35 = vsub.f32 %v4658_v42, %v353_v47  ;;  %v464_v41 = vand.u32 4294901760, %v463_v38 }
  0x68   : > { %v471_v62 = vand.u32 4294901760, %v470_v39  ;;  %v490_v63 = vand.u32 4294901760, %v4783_v36  ;;  %v497_v0 = vand.u32 4294901760, %v4792_v28  ;;  %v484_v4 = vsub.f32 %v4775_v26, %v483_v53 }
  0x69   : > { %3631 = vmatpush3.bf16.msra.mxu1 %v4652_v40  ;;  %3727 = vmatpush3.bf16.msra.mxu0 %v4652_v40  ;;  %v4819_v42 = vsub.f32 %v4663_v43, %v356_v48  ;;  %v4823_v47 = vpack.c.bf16 %v469_v20, %v462_v18  ;;  %v478_v5 = vand.u32 4294901760, %v477_v60  ;;  %v504_v43 = vand.u32 4294901760, %v4805_v35 }
  0x6a   : > { %3633 = vmatprep.subr.bf16.mxu1 %v4693_v52  ;;  %3729 = vmatprep.subr.bf16.mxu0 %v4693_v52  ;;  %v4827_v8 = vpack.c.bf16 %v471_v62, %v464_v41  ;;  %v491_v9 = vsub.f32 %v4783_v36, %v490_v63  ;;  %v498_v10 = vsub.f32 %v4792_v28, %v497_v0  ;;  %v485_v48 = vand.u32 4294901760, %v484_v4 }
  0x6b   : > { %v511_v11 = vand.u32 4294901760, %v4819_v42  ;;  %v4838_v13 = vsub.f32 %v4678_v49, %v359_v56  ;;  %v4843_v15 = vsub.f32 %v4683_v50, %v362_v57  ;;  %v4847_v17 = vpack.c.bf16 %v483_v53, %v476_v32 }
  0x6c   : > { %v492_v18 = vand.u32 4294901760, %v491_v9  ;;  %v499_v20 = vand.u32 4294901760, %v498_v10  ;;  %v505_v22 = vsub.f32 %v4805_v35, %v504_v43  ;;  %v4852_v49 = vpack.c.bf16 %v485_v48, %v478_v5 }
  0x6d   : > { %3635 = vmatpush3.bf16.msra.mxu1 %v4693_v52  ;;  %3731 = vmatpush3.bf16.msra.mxu0 %v4693_v52  ;;  %v512_v56 = vsub.f32 %v4819_v42, %v511_v11  ;;  %v518_v50 = vand.u32 4294901760, %v4838_v13  ;;  %v525_v57 = vand.u32 4294901760, %v4843_v15  ;;  %v4873_v53 = vpack.c.bf16 %v511_v11, %v504_v43 }
  0x6e   : > { %3637 = vmatprep.subr.bf16.mxu1 %v4711_v59  ;;  %3733 = vmatprep.subr.bf16.mxu0 %v4711_v59  ;;  %v4859_v25 = vpack.c.bf16 %v499_v20, %v492_v18  ;;  %v506_v32 = vand.u32 4294901760, %v505_v22  ;;  %v4897_v4 = vpack.c.bf16 %v4698_v55, %v4685_v51  ;;  %v2629_v51 = vld [vmem:[%s4545_s12 + $0x20] sm:$0xff]  ;;  %v4935_v55 = vpack.c.bf16 %v4792_v28, %v4783_v36 }
  0x6f   : > { %v513_v38 = vand.u32 4294901760, %v512_v56  ;;  %v519_v39 = vsub.f32 %v4838_v13, %v518_v50 }
  0x71   : > { %3639 = vmatpush3.bf16.msra.mxu1 %v4711_v59  ;;  %3735 = vmatpush3.bf16.msra.mxu0 %v4711_v59  ;;  %v520_v60 = vand.u32 4294901760, %v519_v39  ;;  %v2431_v39 = vstv %s5227_s11 }
  0x72   : > { %3641 = vmatprep.subr.bf16.mxu1 %v4733_v2  ;;  %3737 = vmatprep.subr.bf16.mxu0 %v4733_v2 }
  0x75   : > { %3643 = vmatpush3.bf16.msra.mxu1 %v4733_v2  ;;  %3739 = vmatpush3.bf16.msra.mxu0 %v4733_v2 }
  0x76   : > { %3645 = vmatprep.subr.bf16.mxu1 %v4769_v21  ;;  %3741 = vmatprep.subr.bf16.mxu0 %v4754_v12 }
  0x78   : > { %3015 = vmatmul.mubr.f32.vlgmr.msra.gmra.mrb[0].mxu1 %v411_v27  ;;  %3120 = vmatmul.mubr.f32.vlgmr.msra.gmra.mrb[0].mxu0 %v409_v3  ;;  %v4813_v3 = vpack.c.bf16 %v457_v37, %v450_v34  ;;  %v4861_v27 = vpack.c.bf16 %v497_v0, %v490_v63  ;;  %v526_v34 = vsub.f32 %v4843_v15, %v525_v57 }
  0x79   : > { %3647 = vmatpush3.bf16.msra.mxu1 %v4769_v21  ;;  %3743 = vmatpush3.bf16.msra.mxu0 %v4754_v12  ;;  %v4871_v37 = vpack.c.bf16 %v513_v38, %v506_v32  ;;  %v4881_v63 = vpack.c.bf16 %v525_v57, %v518_v50  ;;  %v4889_v0 = vpack.c.bf16 %v4667_v45, %v4665_v44  ;;  %v2379_v50 = vstv %s5215_s27 }
  0x7a   : > { %3649 = vmatprep.subr.bf16.mxu1 %v4796_v33  ;;  %3745 = vmatprep.subr.bf16.mxu0 %v4777_v30  ;;  %v527_v41 = vand.u32 4294901760, %v526_v34  ;;  %v4907_v44 = vpack.c.bf16 %v4727_v1, %v4717_v61  ;;  %v4917_v45 = vpack.c.bf16 %v4748_v7, %v4743_v6  ;;  %v4939_v1 = vand.u32 4294901760, %v2629_v51 }
  0x7b   : > { %3049 = vmatprep.mubr.f32.mxu1 %v4593_v23  ;;  %3154 = vmatprep.mubr.f32.mxu0 %v4593_v23  ;;  %v4947_v6 = vpack.c.bf16 %v4819_v42, %v4805_v35  ;;  %v2402_v57 = vstv %s5217_s6  ;;  %v2385_v32 = vstv %s5223_s10  ;;  %v2408_v38 = vstv %s5225_s9 }
  0x7c   : > { %v4879_v62 = vpack.c.bf16 %v527_v41, %v520_v60  ;;  %v2454_v34 = vstv %s5229_s30  ;;  %v2391_v60 = vstv %s5231_s13  ;;  %v2414_v41 = vstv %s5233_s14 }
  0x7d   : > { %3651 = vmatpush3.bf16.msra.mxu1 %v4796_v33  ;;  %3747 = vmatpush3.bf16.msra.mxu0 %v4777_v30 }
  0x7e   : > { %3653 = vmatprep.subr.bf16.mxu1 %v4813_v3  ;;  %3749 = vmatprep.subr.bf16.mxu0 %v4799_v54 }
  0x81   : > { %3655 = vmatpush3.bf16.msra.mxu1 %v4813_v3  ;;  %3751 = vmatpush3.bf16.msra.mxu0 %v4799_v54 }
  0x82   : > { %3657 = vmatprep.subr.bf16.mxu1 %v4827_v8  ;;  %3753 = vmatprep.subr.bf16.mxu0 %v4823_v47 }
  0x85   : > { %3659 = vmatpush3.bf16.msra.mxu1 %v4827_v8  ;;  %3755 = vmatpush3.bf16.msra.mxu0 %v4823_v47 }
  0x86   : > { %3661 = vmatprep.subr.bf16.mxu1 %v4852_v49  ;;  %3757 = vmatprep.subr.bf16.mxu0 %v4847_v17 }
  0x89   : > { %3663 = vmatpush3.bf16.msra.mxu1 %v4852_v49  ;;  %3759 = vmatpush3.bf16.msra.mxu0 %v4847_v17 }
  0x8a   : > { %3665 = vmatprep.subr.bf16.mxu1 %v4859_v25  ;;  %3761 = vmatprep.subr.bf16.mxu0 %v4861_v27 }
  0x8d   : > { %3667 = vmatpush3.bf16.msra.mxu1 %v4859_v25  ;;  %3763 = vmatpush3.bf16.msra.mxu0 %v4861_v27 }
  0x8e   : > { %3669 = vmatprep.subr.bf16.mxu1 %v4871_v37  ;;  %3765 = vmatprep.subr.bf16.mxu0 %v4873_v53 }
  0x91   : > { %3671 = vmatpush3.bf16.msra.mxu1 %v4871_v37  ;;  %3767 = vmatpush3.bf16.msra.mxu0 %v4873_v53 }
  0x92   : > { %3673 = vmatprep.subr.bf16.mxu1 %v4879_v62  ;;  %3769 = vmatprep.subr.bf16.mxu0 %v4881_v63 }
  0x95   : > { %3675 = vmatpush3.bf16.msra.mxu1 %v4879_v62  ;;  %3771 = vmatpush3.bf16.msra.mxu0 %v4881_v63 }
  0x96   : > { %3677 = vmatprep.subr.bf16.mxu1 %v4889_v0  ;;  %3773 = vmatprep.subr.bf16.mxu0 %v4572_v16 }
  0x98   : > { %3050 = vmatmul.mubr.f32.vlgmr.msra.gmra.mrb[0].mxu1 %v4669_v46  ;;  %3155 = vmatmul.mubr.f32.vlgmr.msra.gmra.mrb[0].mxu0 %v4669_v46 }
  0x99   : > { %3679 = vmatpush3.bf16.msra.mxu1 %v4889_v0  ;;  %3775 = vmatpush3.bf16.msra.mxu0 %v4572_v16 }
  0x9a   : > { %3681 = vmatprep.subr.bf16.mxu1 %v4897_v4  ;;  %3777 = vmatprep.subr.bf16.mxu0 %v4576_v19 }
  0x9b   : > { %3084 = vmatprep.mubr.f32.mxu1 %v4616_v29  ;;  %3189 = vmatprep.mubr.f32.mxu0 %v4593_v23  ;;  %v4925_v23 = vpack.c.bf16 %v4775_v26, %v4760_v14  ;;  %v2627_v29 = vld [vmem:[%s4545_s12 + $0x10] sm:$0xff]  ;;  %v4953_v14 = vsub.f32 %v2629_v51, %v4939_v1  ;;  %v4961_v26 = vpack.c.bf16 %v4843_v15, %v4838_v13 }
  0x9c   : > { %v4937_v61 = vand.u32 4294901760, %v2627_v29 }
  0x9d   : > { %3683 = vmatpush3.bf16.msra.mxu1 %v4897_v4  ;;  %3779 = vmatpush3.bf16.msra.mxu0 %v4576_v19  ;;  %v1773_v28 = vand.u32 4294901760, %v4953_v14 }
  0x9e   : > { %3685 = vmatprep.subr.bf16.mxu1 %v4907_v44  ;;  %3781 = vmatprep.subr.bf16.mxu0 %v4601_v24  ;;  %v4950_v7 = vsub.f32 %v2627_v29, %v4937_v61 }
  0x9f   : > { %v1774_v42 = vsub.f32 %v4953_v14, %v1773_v28 }
  0xa0   : > { %v1086_v36 = vand.u32 4294901760, %v4950_v7 }
  0xa1   : > { %3687 = vmatpush3.bf16.msra.mxu1 %v4907_v44  ;;  %3783 = vmatpush3.bf16.msra.mxu0 %v4601_v24  ;;  %v1775_v9 = vand.u32 4294901760, %v1774_v42 }
  0xa2   : > { %3689 = vmatprep.subr.bf16.mxu1 %v4917_v45  ;;  %3785 = vmatprep.subr.bf16.mxu0 %v4627_v31  ;;  %v1087_v35 = vsub.f32 %v4950_v7, %v1086_v36 }
  0xa4   : > { %v1088_v5 = vand.u32 4294901760, %v1087_v35 }
  0xa5   : > { %3691 = vmatpush3.bf16.msra.mxu1 %v4917_v45  ;;  %3787 = vmatpush3.bf16.msra.mxu0 %v4627_v31 }
  0xa6   : > { %3693 = vmatprep.subr.bf16.mxu1 %v4925_v23  ;;  %3789 = vmatprep.subr.bf16.mxu0 %v4652_v40 }
  0xa9   : > { %3695 = vmatpush3.bf16.msra.mxu1 %v4925_v23  ;;  %3791 = vmatpush3.bf16.msra.mxu0 %v4652_v40 }
  0xaa   : > { %3697 = vmatprep.subr.bf16.mxu1 %v4935_v55  ;;  %3793 = vmatprep.subr.bf16.mxu0 %v4693_v52 }
  0xad   : > { %3699 = vmatpush3.bf16.msra.mxu1 %v4935_v55  ;;  %3795 = vmatpush3.bf16.msra.mxu0 %v4693_v52 }
  0xae   : > { %3701 = vmatprep.subr.bf16.mxu1 %v4947_v6  ;;  %3797 = vmatprep.subr.bf16.mxu0 %v4711_v59 }
  0xb1   : > { %3703 = vmatpush3.bf16.msra.mxu1 %v4947_v6  ;;  %3799 = vmatpush3.bf16.msra.mxu0 %v4711_v59 }
  0xb2   : > { %3705 = vmatprep.subr.bf16.mxu1 %v4961_v26  ;;  %3801 = vmatprep.subr.bf16.mxu0 %v4733_v2 }
  0xb5   : > { %3707 = vmatpush3.bf16.msra.mxu1 %v4961_v26  ;;  %3803 = vmatpush3.bf16.msra.mxu0 %v4733_v2 }
  0xb6   : > { %3805 = vmatprep.subr.bf16.mxu1 %v4572_v16  ;;  %3997 = vmatprep.subr.bf16.mxu0 %v4572_v16 }
  0xb8   : > { %3085 = vmatmul.mubr.f32.vlgmr.msra.gmra.mrb[0].mxu1 %v4703_v58  ;;  %3190 = vmatmul.mubr.f32.vlgmr.msra.gmra.mrb[0].mxu0 %v4669_v46  ;;  %v2628_v46 = vld [vmem:[%s4545_s12 + $0x18] sm:$0xff]  ;;  %v2630_v58 = vld [vmem:[%s4545_s12 + $0x28] sm:$0xff]  ;;  %s2374_s12 = sld [smem:[#allocation2]] }
  0xb9   : > { %3807 = vmatpush3.bf16.msra.mxu1 %v4572_v16  ;;  %3999 = vmatpush3.bf16.msra.mxu0 %v4572_v16  ;;  %v4995_v10 = vand.u32 4294901760, %v2628_v46  ;;  %v4997_v43 = vand.u32 4294901760, %v2630_v58 }
  0xba   : > { %3809 = vmatprep.subr.bf16.mxu1 %v4576_v19  ;;  %4001 = vmatprep.subr.bf16.mxu0 %v4576_v19 }
  0xbb   : > { %3224 = vmatprep.mubr.f32.mxu1 %v1088_v5  ;;  %3434 = vmatprep.mubr.f32.mxu0 %v1775_v9  ;;  %v5004_v48 = vsub.f32 %v2628_v46, %v4995_v10  ;;  %v5007_v11 = vsub.f32 %v2630_v58, %v4997_v43 }
  0xbd   : > { %3811 = vmatpush3.bf16.msra.mxu1 %v4576_v19  ;;  %4003 = vmatpush3.bf16.msra.mxu0 %v4576_v19  ;;  %v1096_v13 = vand.u32 4294901760, %v5004_v48  ;;  %v1783_v15 = vand.u32 4294901760, %v5007_v11 }
  0xbe   : > { %3813 = vmatprep.subr.bf16.mxu1 %v4601_v24  ;;  %4005 = vmatprep.subr.bf16.mxu0 %v4601_v24 }
  0xbf   : > { %v1097_v18 = vsub.f32 %v5004_v48, %v1096_v13  ;;  %v1784_v20 = vsub.f32 %v5007_v11, %v1783_v15 }
  0xc1   : > { %3815 = vmatpush3.bf16.msra.mxu1 %v4601_v24  ;;  %4007 = vmatpush3.bf16.msra.mxu0 %v4601_v24  ;;  %v1098_v22 = vand.u32 4294901760, %v1097_v18  ;;  %v1785_v56 = vand.u32 4294901760, %v1784_v20 }
  0xc2   : > { %3817 = vmatprep.subr.bf16.mxu1 %v4627_v31  ;;  %4009 = vmatprep.subr.bf16.mxu0 %v4627_v31 }
  0xc5   : > { %3819 = vmatpush3.bf16.msra.mxu1 %v4627_v31  ;;  %4011 = vmatpush3.bf16.msra.mxu0 %v4627_v31 }
  0xc6   : > { %3821 = vmatprep.subr.bf16.mxu1 %v4652_v40  ;;  %4013 = vmatprep.subr.bf16.mxu0 %v4652_v40 }
  0xc9   : > { %3823 = vmatpush3.bf16.msra.mxu1 %v4652_v40  ;;  %4015 = vmatpush3.bf16.msra.mxu0 %v4652_v40 }
  0xca   : > { %3825 = vmatprep.subr.bf16.mxu1 %v4693_v52  ;;  %4017 = vmatprep.subr.bf16.mxu0 %v4693_v52 }
  0xcd   : > { %3827 = vmatpush3.bf16.msra.mxu1 %v4693_v52  ;;  %4019 = vmatpush3.bf16.msra.mxu0 %v4693_v52 }
  0xce   : > { %3829 = vmatprep.subr.bf16.mxu1 %v4711_v59  ;;  %4021 = vmatprep.subr.bf16.mxu0 %v4711_v59 }
  0xd1   : > { %3831 = vmatpush3.bf16.msra.mxu1 %v4711_v59  ;;  %4023 = vmatpush3.bf16.msra.mxu0 %v4711_v59 }
  0xd2   : > { %3833 = vmatprep.subr.bf16.mxu1 %v4733_v2  ;;  %4025 = vmatprep.subr.bf16.mxu0 %v4733_v2 }
  0xd5   : > { %3835 = vmatpush3.bf16.msra.mxu1 %v4733_v2  ;;  %4027 = vmatpush3.bf16.msra.mxu0 %v4733_v2 }
  0xd6   : > { %3837 = vmatprep.subr.bf16.mxu1 %v4769_v21  ;;  %4029 = vmatprep.subr.bf16.mxu0 %v4769_v21 }
  0xd8   : > { %3225 = vmatmul.mubr.f32.vlgmr.msra.gmra.mrb[2].mxu1 %v1098_v22  ;;  %3435 = vmatmul.mubr.f32.vlgmr.msra.gmra.mrb[2].mxu0 %v1785_v56 }
  0xd9   : > { %3839 = vmatpush3.bf16.msra.mxu1 %v4769_v21  ;;  %4031 = vmatpush3.bf16.msra.mxu0 %v4769_v21  ;;  %v2444_v21 = vstv %s2645_s5 }
  0xda   : > { %3841 = vmatprep.subr.bf16.mxu1 %v4796_v33  ;;  %4033 = vmatprep.subr.bf16.mxu0 %v4796_v33 }
  0xdb   : > { %3259 = vmatprep.mubr.f32.mxu1 %v4937_v61  ;;  %3469 = vmatprep.mubr.f32.mxu0 %v4939_v1 }
  0xdd   : > { %3843 = vmatpush3.bf16.msra.mxu1 %v4796_v33  ;;  %4035 = vmatpush3.bf16.msra.mxu0 %v4796_v33 }
  0xde   : > { %3845 = vmatprep.subr.bf16.mxu1 %v4813_v3  ;;  %4037 = vmatprep.subr.bf16.mxu0 %v4813_v3 }
  0xe1   : > { %3847 = vmatpush3.bf16.msra.mxu1 %v4813_v3  ;;  %4039 = vmatpush3.bf16.msra.mxu0 %v4813_v3 }
  0xe2   : > { %3849 = vmatprep.subr.bf16.mxu1 %v4827_v8  ;;  %4041 = vmatprep.subr.bf16.mxu0 %v4827_v8 }
  0xe5   : > { %3851 = vmatpush3.bf16.msra.mxu1 %v4827_v8  ;;  %4043 = vmatpush3.bf16.msra.mxu0 %v4827_v8 }
  0xe6   : > { %3853 = vmatprep.subr.bf16.mxu1 %v4852_v49  ;;  %4045 = vmatprep.subr.bf16.mxu0 %v4852_v49 }
  0xe9   : > { %3855 = vmatpush3.bf16.msra.mxu1 %v4852_v49  ;;  %4047 = vmatpush3.bf16.msra.mxu0 %v4852_v49 }
  0xea   : > { %3857 = vmatprep.subr.bf16.mxu1 %v4859_v25  ;;  %4049 = vmatprep.subr.bf16.mxu0 %v4859_v25 }
  0xed   : > { %3859 = vmatpush3.bf16.msra.mxu1 %v4859_v25  ;;  %4051 = vmatpush3.bf16.msra.mxu0 %v4859_v25  ;;  %v2425_v25 = vstv %s5219_s7 }
  0xee   : > { %3861 = vmatprep.subr.bf16.mxu1 %v4871_v37  ;;  %4053 = vmatprep.subr.bf16.mxu0 %v4871_v37 }
  0xf1   : > { %3863 = vmatpush3.bf16.msra.mxu1 %v4871_v37  ;;  %4055 = vmatpush3.bf16.msra.mxu0 %v4871_v37 }
  0xf2   : > { %3865 = vmatprep.subr.bf16.mxu1 %v4879_v62  ;;  %4057 = vmatprep.subr.bf16.mxu0 %v4879_v62 }
  0xf5   : > { %3867 = vmatpush3.bf16.msra.mxu1 %v4879_v62  ;;  %4059 = vmatpush3.bf16.msra.mxu0 %v4879_v62  ;;  %v2437_v62 = vstv %s5235_s21 }
  0xf6   : > { %3869 = vmatprep.subr.bf16.mxu1 %v4889_v0  ;;  %4061 = vmatprep.subr.bf16.mxu0 %v4889_v0 }
  0xf8   : > { %3260 = vmatmul.mubr.f32.vlgmr.msra.gmra.mrb[2].mxu1 %v4995_v10  ;;  %3470 = vmatmul.mubr.f32.vlgmr.msra.gmra.mrb[2].mxu0 %v4997_v43 }
  0xf9   : > { %3871 = vmatpush3.bf16.msra.mxu1 %v4889_v0  ;;  %4063 = vmatpush3.bf16.msra.mxu0 %v4889_v0 }
  0xfa   : > { %3873 = vmatprep.subr.bf16.mxu1 %v4897_v4  ;;  %4065 = vmatprep.subr.bf16.mxu0 %v4897_v4 }
  0xfb   : > { %3294 = vmatprep.mubr.f32.mxu1 %v4950_v7  ;;  %3504 = vmatprep.mubr.f32.mxu0 %v4953_v14 }
  0xfd   : > { %3875 = vmatpush3.bf16.msra.mxu1 %v4897_v4  ;;  %4067 = vmatpush3.bf16.msra.mxu0 %v4897_v4 }
  0xfe   : > { %3877 = vmatprep.subr.bf16.mxu1 %v4907_v44  ;;  %4069 = vmatprep.subr.bf16.mxu0 %v4907_v44 }
 0x101   : > { %3879 = vmatpush3.bf16.msra.mxu1 %v4907_v44  ;;  %4071 = vmatpush3.bf16.msra.mxu0 %v4907_v44 }
 0x102   : > { %3881 = vmatprep.subr.bf16.mxu1 %v4917_v45  ;;  %4073 = vmatprep.subr.bf16.mxu0 %v4917_v45 }
 0x105   : > { %3883 = vmatpush3.bf16.msra.mxu1 %v4917_v45  ;;  %4075 = vmatpush3.bf16.msra.mxu0 %v4917_v45 }
 0x106   : > { %3885 = vmatprep.subr.bf16.mxu1 %v4925_v23  ;;  %4077 = vmatprep.subr.bf16.mxu0 %v4925_v23 }
 0x109   : > { %3887 = vmatpush3.bf16.msra.mxu1 %v4925_v23  ;;  %4079 = vmatpush3.bf16.msra.mxu0 %v4925_v23 }
 0x10a   : > { %3889 = vmatprep.subr.bf16.mxu1 %v4935_v55  ;;  %4081 = vmatprep.subr.bf16.mxu0 %v4935_v55 }
 0x10d   : > { %3891 = vmatpush3.bf16.msra.mxu1 %v4935_v55  ;;  %4083 = vmatpush3.bf16.msra.mxu0 %v4935_v55 }
 0x10e   : > { %3893 = vmatprep.subr.bf16.mxu1 %v4947_v6  ;;  %4085 = vmatprep.subr.bf16.mxu0 %v4947_v6 }
 0x111   : > { %3895 = vmatpush3.bf16.msra.mxu1 %v4947_v6  ;;  %4087 = vmatpush3.bf16.msra.mxu0 %v4947_v6 }
 0x112   : > { %3897 = vmatprep.subr.bf16.mxu1 %v4961_v26  ;;  %4089 = vmatprep.subr.bf16.mxu0 %v4961_v26 }
 0x115   : > { %3899 = vmatpush3.bf16.msra.mxu1 %v4961_v26  ;;  %4091 = vmatpush3.bf16.msra.mxu0 %v4961_v26 }
 0x116   : > { %3901 = vmatprep.subr.bf16.mxu1 %v4572_v16  ;;  %4093 = vmatprep.subr.bf16.mxu0 %v4572_v16 }
 0x118   : > { %3295 = vmatmul.mubr.f32.vlgmr.msra.gmra.mrb[2].mxu1 %v5004_v48  ;;  %3505 = vmatmul.mubr.f32.vlgmr.msra.gmra.mrb[2].mxu0 %v5007_v11 }
 0x119   : > { %3903 = vmatpush3.bf16.msra.mxu1 %v4572_v16  ;;  %4095 = vmatpush3.bf16.msra.mxu0 %v4572_v16 }
 0x11a   : > { %3905 = vmatprep.subr.bf16.mxu1 %v4576_v19  ;;  %4097 = vmatprep.subr.bf16.mxu0 %v4576_v19 }
 0x11b   : > { %3329 = vmatprep.mubr.f32.mxu1 %v1086_v36  ;;  %3539 = vmatprep.mubr.f32.mxu0 %v1773_v28 }
 0x11d   : > { %3907 = vmatpush3.bf16.msra.mxu1 %v4576_v19  ;;  %4099 = vmatpush3.bf16.msra.mxu0 %v4576_v19 }
 0x11e   : > { %3909 = vmatprep.subr.bf16.mxu1 %v4601_v24  ;;  %4101 = vmatprep.subr.bf16.mxu0 %v4601_v24 }
 0x121   : > { %3911 = vmatpush3.bf16.msra.mxu1 %v4601_v24  ;;  %4103 = vmatpush3.bf16.msra.mxu0 %v4601_v24 }
 0x122   : > { %3913 = vmatprep.subr.bf16.mxu1 %v4627_v31  ;;  %4105 = vmatprep.subr.bf16.mxu0 %v4627_v31 }
 0x125   : > { %3915 = vmatpush3.bf16.msra.mxu1 %v4627_v31  ;;  %4107 = vmatpush3.bf16.msra.mxu0 %v4627_v31 }
 0x126   : > { %3917 = vmatprep.subr.bf16.mxu1 %v4652_v40  ;;  %4109 = vmatprep.subr.bf16.mxu0 %v4652_v40 }
 0x129   : > { %3919 = vmatpush3.bf16.msra.mxu1 %v4652_v40  ;;  %4111 = vmatpush3.bf16.msra.mxu0 %v4652_v40 }
 0x12a   : > { %3921 = vmatprep.subr.bf16.mxu1 %v4693_v52  ;;  %4113 = vmatprep.subr.bf16.mxu0 %v4693_v52 }
 0x12d   : > { %3923 = vmatpush3.bf16.msra.mxu1 %v4693_v52  ;;  %4115 = vmatpush3.bf16.msra.mxu0 %v4693_v52 }
 0x12e   : > { %3925 = vmatprep.subr.bf16.mxu1 %v4711_v59  ;;  %4117 = vmatprep.subr.bf16.mxu0 %v4711_v59 }
 0x131   : > { %3927 = vmatpush3.bf16.msra.mxu1 %v4711_v59  ;;  %4119 = vmatpush3.bf16.msra.mxu0 %v4711_v59 }
 0x132   : > { %3929 = vmatprep.subr.bf16.mxu1 %v4733_v2  ;;  %4121 = vmatprep.subr.bf16.mxu0 %v4733_v2 }
 0x135   : > { %3931 = vmatpush3.bf16.msra.mxu1 %v4733_v2  ;;  %4123 = vmatpush3.bf16.msra.mxu0 %v4733_v2 }
 0x136   : > { %3933 = vmatprep.subr.bf16.mxu1 %v4754_v12  ;;  %4125 = vmatprep.subr.bf16.mxu0 %v4754_v12 }
 0x138   : > { %3330 = vmatmul.mubr.f32.vlgmr.msra.gmra.mrb[2].mxu1 %v1096_v13  ;;  %3540 = vmatmul.mubr.f32.vlgmr.msra.gmra.mrb[2].mxu0 %v1783_v15 }
 0x139   : > { %3935 = vmatpush3.bf16.msra.mxu1 %v4754_v12  ;;  %4127 = vmatpush3.bf16.msra.mxu0 %v4754_v12  ;;  %v2421_v12 = vstv %s2639_s24 }
 0x13a   : > { %3937 = vmatprep.subr.bf16.mxu1 %v4777_v30  ;;  %4129 = vmatprep.subr.bf16.mxu0 %v4777_v30 }
 0x13b   : > { %3364 = vmatprep.mubr.f32.mxu1 %v4937_v61  ;;  %3574 = vmatprep.mubr.f32.mxu0 %v4939_v1 }
 0x13d   : > { %3939 = vmatpush3.bf16.msra.mxu1 %v4777_v30  ;;  %4131 = vmatpush3.bf16.msra.mxu0 %v4777_v30 }
 0x13e   : > { %3941 = vmatprep.subr.bf16.mxu1 %v4799_v54  ;;  %4133 = vmatprep.subr.bf16.mxu0 %v4799_v54 }
 0x141   : > { %3943 = vmatpush3.bf16.msra.mxu1 %v4799_v54  ;;  %4135 = vmatpush3.bf16.msra.mxu0 %v4799_v54 }
 0x142   : > { %3945 = vmatprep.subr.bf16.mxu1 %v4823_v47  ;;  %4137 = vmatprep.subr.bf16.mxu0 %v4823_v47 }
 0x145   : > { %3947 = vmatpush3.bf16.msra.mxu1 %v4823_v47  ;;  %4139 = vmatpush3.bf16.msra.mxu0 %v4823_v47 }
 0x146   : > { %3949 = vmatprep.subr.bf16.mxu1 %v4847_v17  ;;  %4141 = vmatprep.subr.bf16.mxu0 %v4847_v17 }
 0x149   : > { %3951 = vmatpush3.bf16.msra.mxu1 %v4847_v17  ;;  %4143 = vmatpush3.bf16.msra.mxu0 %v4847_v17 }
 0x14a   : > { %3953 = vmatprep.subr.bf16.mxu1 %v4861_v27  ;;  %4145 = vmatprep.subr.bf16.mxu0 %v4861_v27 }
 0x14d   : > { %3955 = vmatpush3.bf16.msra.mxu1 %v4861_v27  ;;  %4147 = vmatpush3.bf16.msra.mxu0 %v4861_v27  ;;  %v2448_v27 = vstv %s5221_s8 }
 0x14e   : > { %3957 = vmatprep.subr.bf16.mxu1 %v4873_v53  ;;  %4149 = vmatprep.subr.bf16.mxu0 %v4873_v53 }
 0x151   : > { %3959 = vmatpush3.bf16.msra.mxu1 %v4873_v53  ;;  %4151 = vmatpush3.bf16.msra.mxu0 %v4873_v53 }
 0x152   : > { %3961 = vmatprep.subr.bf16.mxu1 %v4881_v63  ;;  %4153 = vmatprep.subr.bf16.mxu0 %v4881_v63 }
 0x155   : > { %3963 = vmatpush3.bf16.msra.mxu1 %v4881_v63  ;;  %4155 = vmatpush3.bf16.msra.mxu0 %v4881_v63  ;;  %v2460_v63 = vstv %s5237_s0  ;;  %s2626_s0 = sshll.u32 %s4542_s25, 6 }
 0x156   : > { %3965 = vmatprep.subr.bf16.mxu1 %v4572_v16  ;;  %4157 = vmatprep.subr.bf16.mxu0 %v4572_v16 }
 0x158   : > { %3365 = vmatmul.mubr.f32.vlgmr.msra.gmra.mrb[2].mxu1 %v4995_v10  ;;  %3575 = vmatmul.mubr.f32.vlgmr.msra.gmra.mrb[2].mxu0 %v4997_v43 }
 0x159   : > { %3967 = vmatpush3.bf16.msra.mxu1 %v4572_v16  ;;  %4159 = vmatpush3.bf16.msra.mxu0 %v4572_v16 }
 0x15a   : > { %3969 = vmatprep.subr.bf16.mxu1 %v4576_v19  ;;  %4161 = vmatprep.subr.bf16.mxu0 %v4576_v19 }
 0x15b   : > { %3399 = vmatprep.mubr.f32.mxu1 %v4937_v61  ;;  %3609 = vmatprep.mubr.f32.mxu0 %v4939_v1 }
 0x15d   : > { %3971 = vmatpush3.bf16.msra.mxu1 %v4576_v19  ;;  %4163 = vmatpush3.bf16.msra.mxu0 %v4576_v19 }
 0x15e   : > { %3973 = vmatprep.subr.bf16.mxu1 %v4601_v24  ;;  %4165 = vmatprep.subr.bf16.mxu0 %v4601_v24 }
 0x161   : > { %3975 = vmatpush3.bf16.msra.mxu1 %v4601_v24  ;;  %4167 = vmatpush3.bf16.msra.mxu0 %v4601_v24 }
 0x162   : > { %3977 = vmatprep.subr.bf16.mxu1 %v4627_v31  ;;  %4169 = vmatprep.subr.bf16.mxu0 %v4627_v31 }
 0x165   : > { %3979 = vmatpush3.bf16.msra.mxu1 %v4627_v31  ;;  %4171 = vmatpush3.bf16.msra.mxu0 %v4627_v31 }
 0x166   : > { %3981 = vmatprep.subr.bf16.mxu1 %v4652_v40  ;;  %4173 = vmatprep.subr.bf16.mxu0 %v4652_v40 }
 0x169   : > { %3983 = vmatpush3.bf16.msra.mxu1 %v4652_v40  ;;  %4175 = vmatpush3.bf16.msra.mxu0 %v4652_v40 }
 0x16a   : > { %3985 = vmatprep.subr.bf16.mxu1 %v4693_v52  ;;  %4177 = vmatprep.subr.bf16.mxu0 %v4693_v52 }
 0x16d   : > { %3987 = vmatpush3.bf16.msra.mxu1 %v4693_v52  ;;  %4179 = vmatpush3.bf16.msra.mxu0 %v4693_v52 }
 0x16e   : > { %3989 = vmatprep.subr.bf16.mxu1 %v4711_v59  ;;  %4181 = vmatprep.subr.bf16.mxu0 %v4711_v59 }
 0x171   : > { %3991 = vmatpush3.bf16.msra.mxu1 %v4711_v59  ;;  %4183 = vmatpush3.bf16.msra.mxu0 %v4711_v59  ;;  %v2375_v59 = vstv %s2374_s12  ;;  %s295_s12 = scalar_lea.vmem [#allocation8], %s2626_s0 }
 0x172   : > { %3993 = vmatprep.subr.bf16.mxu1 %v4733_v2  ;;  %4185 = vmatprep.subr.bf16.mxu0 %v4733_v2 }
 0x175   : > { %3995 = vmatpush3.bf16.msra.mxu1 %v4733_v2  ;;  %4187 = vmatpush3.bf16.msra.mxu0 %v4733_v2  ;;  %v2398_v2 = vstv %s2633_s22  ;;  %s2467_s22 = scalar_lea.sflag [#allocation3], %s4542_s25 }
 0x178   : > { %3400 = vmatmul.mubr.f32.vlgmr.msra.gmra.mrb[2].mxu1 %v4995_v10  ;;  %3610 = vmatmul.mubr.f32.vlgmr.msra.gmra.mrb[2].mxu0 %v4997_v43 }
 0x18b   : > { %v3086_v16 = vpop.f32.mrb[0].mxu1  ;;  %v3191_v19 = vpop.f32.mrb[0].mxu0 }
 0x18c   : > { %v4188_v24 = vadd.f32 %v3191_v19, %v3086_v16  ;;  %v674_v31 = vpop.f32.mrb[1].mxu1  ;;  %v990_v40 = vpop.f32.mrb[1].mxu0 }
 0x18d   : > { %v4189_v52 = vadd.f32 %v990_v40, %v674_v31 }
 0x18e   : > { %v2377_v30 = vmul.f32 %v4188_v24, %v2375_v59  ;;  %v2400_v33 = vmul.f32 %v4188_v24, %v2398_v2  ;;  %v2423_v54 = vmul.f32 %v4188_v24, %v2421_v12  ;;  %v2446_v3 = vmul.f32 %v4188_v24, %v2444_v21 }
 0x18f   : > { %v2376_v47 = vmul.f32 %v4189_v52, %v2375_v59  ;;  %v2399_v8 = vmul.f32 %v4189_v52, %v2398_v2  ;;  %v2422_v17 = vmul.f32 %v4189_v52, %v2421_v12  ;;  %v2445_v49 = vmul.f32 %v4189_v52, %v2444_v21 }
 0x24b   : > { %v3401_v37 = vpop.f32.mrb[2].mxu1  ;;  %v3611_v53 = vpop.f32.mrb[2].mxu0 }
 0x24c   : > { %v1677_v0 = vpop.f32.mrb[3].mxu1  ;;  %v2381_v4 = vmul.f32 %v3401_v37, %v2379_v50  ;;  %v2404_v44 = vmul.f32 %v3401_v37, %v2402_v57  ;;  %v2427_v45 = vmul.f32 %v3401_v37, %v2425_v25  ;;  %v2450_v23 = vmul.f32 %v3401_v37, %v2448_v27  ;;  %v2364_v29 = vpop.f32.mrb[3].mxu0 }
 0x24d   : > { %v2380_v51 = vmul.f32 %v2379_v50, %v1677_v0  ;;  %v2403_v55 = vmul.f32 %v2402_v57, %v1677_v0  ;;  %v2426_v61 = vmul.f32 %v2425_v25, %v1677_v0  ;;  %v2449_v1 = vmul.f32 %v2448_v27, %v1677_v0 }
 0x24e   : > { %v2383_v6 = vadd.f32 %v2381_v4, %v2377_v30  ;;  %v2406_v7 = vadd.f32 %v2404_v44, %v2400_v33  ;;  %v2429_v14 = vadd.f32 %v2427_v45, %v2423_v54  ;;  %v2452_v26 = vadd.f32 %v2450_v23, %v2446_v3 }
 0x24f   : > { %v2382_v36 = vadd.f32 %v2380_v51, %v2376_v47  ;;  %v2405_v28 = vadd.f32 %v2403_v55, %v2399_v8  ;;  %v2428_v35 = vadd.f32 %v2426_v61, %v2422_v17  ;;  %v2451_v42 = vadd.f32 %v2449_v1, %v2445_v49 }
 0x250   : > { %v2386_v5 = vmul.f32 %v2385_v32, %v2364_v29  ;;  %v2387_v9 = vmul.f32 %v3611_v53, %v2385_v32  ;;  %v2409_v46 = vmul.f32 %v2408_v38, %v2364_v29  ;;  %v2410_v58 = vmul.f32 %v3611_v53, %v2408_v38 }
 0x251   : > { %v2432_v10 = vmul.f32 %v2431_v39, %v2364_v29  ;;  %v2433_v43 = vmul.f32 %v3611_v53, %v2431_v39  ;;  %v2455_v48 = vmul.f32 %v2454_v34, %v2364_v29  ;;  %v2456_v11 = vmul.f32 %v3611_v53, %v2454_v34 }
 0x252   : > { %v2388_v13 = vadd.f32 %v2386_v5, %v2382_v36  ;;  %v2389_v15 = vadd.f32 %v2387_v9, %v2383_v6  ;;  %v2411_v18 = vadd.f32 %v2409_v46, %v2405_v28  ;;  %v2412_v20 = vadd.f32 %v2410_v58, %v2406_v7 }
 0x253   : > { %v2434_v22 = vadd.f32 %v2432_v10, %v2428_v35  ;;  %v2435_v56 = vadd.f32 %v2433_v43, %v2429_v14  ;;  %v2457_v16 = vadd.f32 %v2455_v48, %v2451_v42  ;;  %v2458_v19 = vadd.f32 %v2456_v11, %v2452_v26 }
 0x254   : > { %v2392_v24 = vadd.f32 %v2391_v60, %v2388_v13  ;;  %v2393_v31 = vadd.f32 %v2391_v60, %v2389_v15  ;;  %v2415_v40 = vadd.f32 %v2414_v41, %v2411_v18  ;;  %v2416_v52 = vadd.f32 %v2414_v41, %v2412_v20 }
 0x255   : > { %v2438_v59 = vadd.f32 %v2437_v62, %v2434_v22  ;;  %v2439_v2 = vadd.f32 %v2437_v62, %v2435_v56  ;;  %v2461_v12 = vadd.f32 %v2460_v63, %v2457_v16  ;;  %v2462_v21 = vadd.f32 %v2460_v63, %v2458_v19 }
 0x256   : > { %2395 = vst.msk [vmem:[%s295_s12] sm:$0xff] %vm2394_vm0, %v2392_v24  ;;  %2396 = vst.msk [vmem:[%s295_s12 + $0x8] sm:$0xff] %vm2394_vm0, %v2393_v31 }
 0x257   : > { %2637 = vst.msk [vmem:[%s295_s12 + $0x10] sm:$0xff] %vm2394_vm0, %v2415_v40  ;;  %2638 = vst.msk [vmem:[%s295_s12 + $0x18] sm:$0xff] %vm2394_vm0, %v2416_v52 }
 0x258   : > { %2643 = vst.msk [vmem:[%s295_s12 + $0x20] sm:$0xff] %vm2394_vm0, %v2438_v59  ;;  %2644 = vst.msk [vmem:[%s295_s12 + $0x28] sm:$0xff] %vm2394_vm0, %v2439_v2 }
 0x259   : > { %2649 = vst.msk [vmem:[%s295_s12 + $0x30] sm:$0xff] %vm2394_vm0, %v2461_v12  ;;  %2650 = vst.msk [vmem:[%s295_s12 + $0x38] sm:$0xff] %vm2394_vm0, %v2462_v21 }
 0x25a   : > { %s2657_s24 = sshll.u32 %s4389_s18, 8  ;;  %s2498_s5 = sshll.u32 %s295_s12, 4  ;;  %s2499_s5 = int_to_ptr.vmem [resolvable:$true] %s2498_s5 }
 0x25b   : > { %s2481_s7 = scalar_lea.hbm %s5306_s4, %s2657_s24  ;;  %s4401_s8 = smov 256  }
 0x25c   : > { %p5322_p12 = scmp.ne.s32.totalorder %s5313_s26, 0  ;;  %s4402_s10 = smov 512  }
 0x25d   : > { %s4403_s25 = smov 2   ;;  %s4404_s9 = smov 128  }
 0x25e   : > { %4228 = sst [smem:[#allocation10]] (%p5322_p12), %s4401_s8  ;;  %s4405_s18 = smov 8  }
 0x25f   : > { %4229 = sst [smem:[#allocation10 + $0x1]] (%p5322_p12), %s4402_s10  ;;  %s4406_s11 = smov [#allocation9]  }
 0x260   : > { %4230 = sst [smem:[#allocation10 + $0x2]] (%p5322_p12), %s4403_s25  ;;  %s4407_s30 = smov 0  }
 0x261   : > { %4231 = sst [smem:[#allocation10 + $0x3]] (%p5322_p12), %s4404_s9 }
 0x262   : > { %4232 = sst [smem:[#allocation10 + $0x4]] (%p5322_p12), %s4404_s9 }
 0x263   : > { %4233 = sst [smem:[#allocation10 + $0x5]] (%p5322_p12), %s4405_s18 }
 0x264   : > { %4234 = dma.general (%p5322_p12), %s2499_s5, 1024, %s2481_s7, %s2467_s22, %s4406_s11, [#allocation10], %s4407_s30, 0  }
 0x265 PF: > { %s2526_s13 = sand.u32 1, %s4377_s15   ;;  %p5323_p13 = scmp.ne.s32.totalorder %s5314_s29, 0 }
 0x266   : > { %s2527_s14 = scalar_lea.sflag [#allocation3], %s2526_s13 }
 0x267   : > { %p4244_p1 = pnand %p2620_p11, %p5323_p13 }
 0x269   : > { %4372 = dma.done.wait (!%p4244_p1), %s2527_s14, 1024  }
 0x26a   : > { %4374 = vsyncadd (!%p4244_p1), %s2527_s14, 4294966272  ;;  %s19_s20 = sadd.s32 1, %s4397_s20   ;;  %s5324_s15 = smov %s4381_s16 }
 0x26b   : > { %p16_p3 = scmp.ge.s32.totalorder %s19_s20, 4   ;;  %s5325_s16 = smov %s4385_s17 }
 0x26c   : > { %s5326_s17 = smov %s4487_s28  ;;  %s5327_s18 = smov %s4393_s19 }
 0x26d   : > { %s5328_s19 = smov %s5330_s23  ;;  %18 = sbr.rel (!%p16_p3) target bundleno = 8 (0x8), region = 133 }
 0x274   :  { %2532 = vsyncpa [#allocation3], 1 }
 0x275   :  { %2534 = vsyncpa [#allocation3 + $0x1], 1 }
 0x276   :  { %2535 = vsyncpa [#allocation4], 1 }
 0x277   :  { %2537 = vsyncpa [#allocation4 + $0x1], 1 }
 0x278   :  { %2538 = vsyncpa [#allocation6], 1 }

</bundles_post_ra>
